<compile_context>
chip_gen: v7x
topology: tpu7x:2x2x1
jax: 0.10.0
libtpu: 0.0.40
codegen_flags: <defaults>
</compile_context>

<pallas_src>
import math

import jax
import jax.numpy as jnp
from jax.experimental import pallas as pl
from jax.experimental.pallas import tpu as pltpu

_LANE = 128


def _round_up(x, m):
    return ((x + m - 1) // m) * m


def net_mlp_kernel(x_ref, w1_ref, b1_ref, w2_ref, b2_ref, w3_ref, b3_ref,
                   o_ref):
    """Fused MLP forward for one batch tile, computed in transposed orientation.

    x_ref : (BT, n_in) f32   -- natural HBM layout of the input batch tile
    w*    : (out, in)  f32   -- PyTorch nn.Linear orientation
    b*    : (out, 1)   f32
    o_ref : (n_out, BT)      -- batch on lanes => lane-dense (unmasked) stores
    """
    x = x_ref[...]                                            # (BT, 8) f32

    # h1^T = W1 @ x^T : contract the minor dim of both operands (the
    # attention-style 'a @ b.T' form), so the x-tile relayout is fused into
    # the matmul instead of being a separate transpose.
    nt = (((1,), (1,)), ((), ()))
    h = jax.lax.dot_general(w1_ref[...], x, nt,
                            preferred_element_type=jnp.float32)   # (32, BT)
    h = jnp.maximum(h + b1_ref[...], 0.0)                     # relu (dropout p=0)

    # h2^T = W2 @ h1^T
    h = jnp.dot(w2_ref[...], h, preferred_element_type=jnp.float32)  # (16, BT)
    h = jnp.maximum(h + b2_ref[...], 0.0)

    # logits^T = W3 @ h2^T  (no activation after the last layer)
    logits = jnp.dot(w3_ref[...], h, preferred_element_type=jnp.float32)
    logits = logits + b3_ref[...]                             # (3, BT)

    # log_softmax over the class axis (axis 0: just 3 sublane rows),
    # numerically stable, all in f32.
    m = jnp.max(logits, axis=0, keepdims=True)                # (1, BT)
    shifted = logits - m
    lse = jnp.log(jnp.sum(jnp.exp(shifted), axis=0, keepdims=True))
    o_ref[...] = (shifted - lse).astype(o_ref.dtype)


def net_forward(x, params, *, block_batch=8192, out_dtype=jnp.float32):
    """x: (B, n_inputs) f32.  params: [(W (out,in), b (out,1)), ...] f32.

    Returns log-probabilities of shape (B, n_outputs)."""
    (w1, b1), (w2, b2), (w3, b3) = params
    B, n_in = x.shape
    h1, h2, n_out = w1.shape[0], w2.shape[0], w3.shape[0]

    # Batch tile: multiple of 128 (lane width, since batch sits on lanes for
    # compute/output), capped at block_batch, and chosen so the grid has >= 2
    # steps whenever B allows it (v7x has 2 TensorCores sharding the
    # "parallel" axis; harmless on single-TC v5e/v6e).
    BT = max(_LANE, min(block_batch, _round_up((B + 1) // 2, _LANE)))
    Bp = _round_up(B, BT)
    if Bp != B:
        x = jnp.pad(x, ((0, Bp - B), (0, 0)))
    grid = (Bp // BT,)

    out_bytes = jnp.dtype(out_dtype).itemsize
    flops = 2 * Bp * (n_in * h1 + h1 * h2 + h2 * n_out)
    transcendentals = Bp * (n_out + 1)                 # exp per class + log
    bytes_accessed = (
        Bp * n_in * 4 + Bp * n_out * out_bytes
        + (w1.size + w2.size + w3.size + b1.size + b2.size + b3.size) * 4)

    # Weights / biases: full-shape blocks with constant index_map -> fetched
    # once and kept VMEM-resident across all batch-tile grid steps.
    const = lambda i: (0, 0)
    weight_specs = [
        pl.BlockSpec(w1.shape, const), pl.BlockSpec(b1.shape, const),
        pl.BlockSpec(w2.shape, const), pl.BlockSpec(b2.shape, const),
        pl.BlockSpec(w3.shape, const), pl.BlockSpec(b3.shape, const),
    ]

    out_t = pl.pallas_call(
        net_mlp_kernel,
        out_shape=jax.ShapeDtypeStruct((n_out, Bp), out_dtype),
        grid=grid,
        in_specs=[pl.BlockSpec((BT, n_in), lambda i: (i, 0))] + weight_specs,
        out_specs=pl.BlockSpec((n_out, BT), lambda i: (0, i)),
        compiler_params=pltpu.CompilerParams(
            dimension_semantics=("parallel",)),
        cost_estimate=pl.CostEstimate(
            flops=flops,
            transcendentals=transcendentals,
            bytes_accessed=bytes_accessed),
    )(x, w1, b1, w2, b2, w3, b3)

    # Back to PyTorch's (B, n_out) orientation; tiny XLA slice + transpose on
    # the (3, Bp) result, and padded rows (>= B) are dropped here.
    return out_t[:, :B].T


def init_linear_params(key, in_features, out_features):
    """Deterministic init matching torch.nn.Linear's default:
    weight, bias ~ U(-1/sqrt(in), 1/sqrt(in)).
    Returns (W (out, in), b (out, 1)) — PyTorch orientation."""
    stdv = 1.0 / math.sqrt(in_features)
    k_w, k_b = jax.random.split(key)
    w = jax.random.uniform(k_w, (out_features, in_features),
                           minval=-stdv, maxval=stdv, dtype=jnp.float32)
    b = jax.random.uniform(k_b, (out_features, 1),
                           minval=-stdv, maxval=stdv, dtype=jnp.float32)
    return w, b


def reference_forward(x, params):
    """Pure-JAX f32 reference (matches the PyTorch f32 forward)."""
    (w1, b1), (w2, b2), (w3, b3) = params
    hi = jax.lax.Precision.HIGHEST
    h = jnp.maximum(jnp.dot(x, w1.T, precision=hi) + b1.T, 0.0)
    h = jnp.maximum(jnp.dot(h, w2.T, precision=hi) + b2.T, 0.0)
    logits = jnp.dot(h, w3.T, precision=hi) + b3.T
    return jax.nn.log_softmax(logits, axis=1)


if __name__ == "__main__":
    # layer_units = [n_inputs] + hidden_layer_sizes + [n_outputs] = [8, 32, 16, 3]
    n_inputs, hidden1, hidden2, n_outputs = 8, 32, 16, 3
    batch = 400   # not a multiple of the 128-lane tile: exercises padding;
                  # the tile cap gives a 2-step grid (both v7x TCs engaged).

    root = jax.random.PRNGKey(0)
    k_x, k1, k2, k3 = jax.random.split(root, 4)

    x = jax.random.normal(k_x, (batch, n_inputs), dtype=jnp.float32)
    params = [
        init_linear_params(k1, n_inputs, hidden1),
        init_linear_params(k2, hidden1, hidden2),
        init_linear_params(k3, hidden2, n_outputs),
    ]

    out = jax.block_until_ready(net_forward(x, params))
    ref = jax.block_until_ready(reference_forward(x, params))

    assert out.shape == (batch, n_outputs)
    assert bool(jnp.all(jnp.isfinite(out))), "non-finite output"
    assert jnp.allclose(out, ref, atol=1e-4, rtol=1e-4), "mismatch vs JAX reference"

    print("KERNEL_OK")
</pallas_src>

<mosaic_0001>
module attributes {stable_mosaic.version = 11 : i64} {
  func.func @net_mlp_kernel(%arg0: i32, %arg1: memref<256x8xf32, #tpu.memory_space<vmem>>, %arg2: memref<32x8xf32, #tpu.memory_space<vmem>>, %arg3: memref<32x1xf32, #tpu.memory_space<vmem>>, %arg4: memref<16x32xf32, #tpu.memory_space<vmem>>, %arg5: memref<16x1xf32, #tpu.memory_space<vmem>>, %arg6: memref<3x16xf32, #tpu.memory_space<vmem>>, %arg7: memref<3x1xf32, #tpu.memory_space<vmem>>, %arg8: memref<3x256xf32, #tpu.memory_space<vmem>>) attributes {dimension_semantics = [#tpu.dimension_semantics<parallel>], iteration_bounds = array<i64: 2>, scalar_prefetch = 0 : i64, scratch_operands = 0 : i64, tpu.core_type = #tpu.core_type<tc>, window_params = [{transform_indices = @transform_0, window_bounds = array<i64: 256, 8>}, {pipeline_mode = #tpu.pipeline_mode<synchronous>, transform_indices = @transform_1, window_bounds = array<i64: 32, 8>}, {pipeline_mode = #tpu.pipeline_mode<synchronous>, transform_indices = @transform_2, window_bounds = array<i64: 32, 1>}, {pipeline_mode = #tpu.pipeline_mode<synchronous>, transform_indices = @transform_3, window_bounds = array<i64: 16, 32>}, {pipeline_mode = #tpu.pipeline_mode<synchronous>, transform_indices = @transform_4, window_bounds = array<i64: 16, 1>}, {pipeline_mode = #tpu.pipeline_mode<synchronous>, transform_indices = @transform_5, window_bounds = array<i64: 3, 16>}, {pipeline_mode = #tpu.pipeline_mode<synchronous>, transform_indices = @transform_6, window_bounds = array<i64: 3, 1>}, {transform_indices = @transform_7, window_bounds = array<i64: 3, 256>}]} {
    %c0 = arith.constant 0 : index
    %c0_0 = arith.constant 0 : index
    %0 = vector.load %arg1[%c0, %c0_0] : memref<256x8xf32, #tpu.memory_space<vmem>>, vector<256x8xf32>
    %c0_1 = arith.constant 0 : index
    %c0_2 = arith.constant 0 : index
    %1 = vector.load %arg2[%c0_1, %c0_2] : memref<32x8xf32, #tpu.memory_space<vmem>>, vector<32x8xf32>
    %cst = arith.constant dense<0.000000e+00> : vector<32x256xf32>
    %2 = tpu.matmul %1, %0, %cst {dimension_numbers = #tpu.dot_dimension_numbers<[1], [1], [0], [0], [0, 0, 1, 0], [], []>} : vector<32x8xf32>, vector<256x8xf32>, vector<32x256xf32> -> vector<32x256xf32>
    %c0_3 = arith.constant 0 : index
    %c0_4 = arith.constant 0 : index
    %3 = vector.load %arg3[%c0_3, %c0_4] : memref<32x1xf32, #tpu.memory_space<vmem>>, vector<32x1xf32>
    %4 = vector.broadcast %3 : vector<32x1xf32> to vector<32x256xf32>
    %5 = arith.addf %2, %4 : vector<32x256xf32>
    %cst_5 = arith.constant 0.000000e+00 : f32
    %6 = vector.broadcast %cst_5 : f32 to vector<32x256xf32>
    %7 = arith.maximumf %5, %6 : vector<32x256xf32>
    %c0_6 = arith.constant 0 : index
    %c0_7 = arith.constant 0 : index
    %8 = vector.load %arg4[%c0_6, %c0_7] : memref<16x32xf32, #tpu.memory_space<vmem>>, vector<16x32xf32>
    %cst_8 = arith.constant dense<0.000000e+00> : vector<16x256xf32>
    %9 = tpu.matmul %8, %7, %cst_8 {dimension_numbers = #tpu.dot_dimension_numbers<[1], [0], [0], [1], [0, 0, 1, 1], [], []>} : vector<16x32xf32>, vector<32x256xf32>, vector<16x256xf32> -> vector<16x256xf32>
    %c0_9 = arith.constant 0 : index
    %c0_10 = arith.constant 0 : index
    %10 = vector.load %arg5[%c0_9, %c0_10] : memref<16x1xf32, #tpu.memory_space<vmem>>, vector<16x1xf32>
    %11 = vector.broadcast %10 : vector<16x1xf32> to vector<16x256xf32>
    %12 = arith.addf %9, %11 : vector<16x256xf32>
    %cst_11 = arith.constant 0.000000e+00 : f32
    %13 = vector.broadcast %cst_11 : f32 to vector<16x256xf32>
    %14 = arith.maximumf %12, %13 : vector<16x256xf32>
    %c0_12 = arith.constant 0 : index
    %c0_13 = arith.constant 0 : index
    %15 = vector.load %arg6[%c0_12, %c0_13] : memref<3x16xf32, #tpu.memory_space<vmem>>, vector<3x16xf32>
    %cst_14 = arith.constant dense<0.000000e+00> : vector<3x256xf32>
    %16 = tpu.matmul %15, %14, %cst_14 {dimension_numbers = #tpu.dot_dimension_numbers<[1], [0], [0], [1], [0, 0, 1, 1], [], []>} : vector<3x16xf32>, vector<16x256xf32>, vector<3x256xf32> -> vector<3x256xf32>
    %c0_15 = arith.constant 0 : index
    %c0_16 = arith.constant 0 : index
    %17 = vector.load %arg7[%c0_15, %c0_16] : memref<3x1xf32, #tpu.memory_space<vmem>>, vector<3x1xf32>
    %18 = vector.broadcast %17 : vector<3x1xf32> to vector<3x256xf32>
    %19 = arith.addf %16, %18 : vector<3x256xf32>
    %cst_17 = arith.constant dense<0xFF800000> : vector<256xf32>
    %20 = vector.multi_reduction <maximumf>, %19, %cst_17 [0] : vector<3x256xf32> to vector<256xf32>
    %21 = vector.shape_cast %20 : vector<256xf32> to vector<1x256xf32>
    %22 = vector.broadcast %21 : vector<1x256xf32> to vector<3x256xf32>
    %23 = arith.subf %19, %22 : vector<3x256xf32>
    %24 = math.exp %23 : vector<3x256xf32>
    %cst_18 = arith.constant dense<0.000000e+00> : vector<256xf32>
    %25 = vector.multi_reduction <add>, %24, %cst_18 [0] : vector<3x256xf32> to vector<256xf32>
    %26 = vector.shape_cast %25 : vector<256xf32> to vector<1x256xf32>
    %27 = math.log %26 : vector<1x256xf32>
    %28 = vector.broadcast %27 : vector<1x256xf32> to vector<3x256xf32>
    %29 = arith.subf %23, %28 : vector<3x256xf32>
    %c0_19 = arith.constant 0 : index
    %c0_20 = arith.constant 0 : index
    %30 = vector.load %arg8[%c0_19, %c0_20] : memref<3x256xf32, #tpu.memory_space<vmem>>, vector<3x256xf32>
    tpu.vector_store %arg8[%c0_19, %c0_20], %29 {strides = array<i32>} : memref<3x256xf32, #tpu.memory_space<vmem>>, vector<3x256xf32>,
    return
  }
  func.func @transform_0(%arg0: i32) -> (i32, i32) {
    %c0_i32 = arith.constant 0 : i32
    %c0_i32_0 = arith.constant 0 : i32
    return %arg0, %c0_i32 : i32, i32
  }
  func.func @transform_1(%arg0: i32) -> (i32, i32) {
    %c0_i32 = arith.constant 0 : i32
    %c0_i32_0 = arith.constant 0 : i32
    %c0_i32_1 = arith.constant 0 : i32
    return %c0_i32, %c0_i32_0 : i32, i32
  }
  func.func @transform_2(%arg0: i32) -> (i32, i32) {
    %c0_i32 = arith.constant 0 : i32
    %c0_i32_0 = arith.constant 0 : i32
    %c0_i32_1 = arith.constant 0 : i32
    return %c0_i32, %c0_i32_0 : i32, i32
  }
  func.func @transform_3(%arg0: i32) -> (i32, i32) {
    %c0_i32 = arith.constant 0 : i32
    %c0_i32_0 = arith.constant 0 : i32
    %c0_i32_1 = arith.constant 0 : i32
    return %c0_i32, %c0_i32_0 : i32, i32
  }
  func.func @transform_4(%arg0: i32) -> (i32, i32) {
    %c0_i32 = arith.constant 0 : i32
    %c0_i32_0 = arith.constant 0 : i32
    %c0_i32_1 = arith.constant 0 : i32
    return %c0_i32, %c0_i32_0 : i32, i32
  }
  func.func @transform_5(%arg0: i32) -> (i32, i32) {
    %c0_i32 = arith.constant 0 : i32
    %c0_i32_0 = arith.constant 0 : i32
    %c0_i32_1 = arith.constant 0 : i32
    return %c0_i32, %c0_i32_0 : i32, i32
  }
  func.func @transform_6(%arg0: i32) -> (i32, i32) {
    %c0_i32 = arith.constant 0 : i32
    %c0_i32_0 = arith.constant 0 : i32
    %c0_i32_1 = arith.constant 0 : i32
    return %c0_i32, %c0_i32_0 : i32, i32
  }
  func.func @transform_7(%arg0: i32) -> (i32, i32) {
    %c0_i32 = arith.constant 0 : i32
    %c0_i32_0 = arith.constant 0 : i32
    return %c0_i32, %arg0 : i32, i32
  }
}

</mosaic_0001>

<bundles_post_ra>
// kernel: tpu_custom_call.1
= control target key start
LH: loop header
LB: loop body
LE: loop exit
PB: predicated region body
PF: predicated region fallthrough
CT: control target
= control target key end

     0   :  { %12 = vsyncpa [#allocation3], 0  ;;  %s1389_s0 = inlined_call_operand.vmem [shape: f32[512,8], index: 0, kind: input, shape index: {}]   ;;  %s1390_s1 = inlined_call_operand.vmem [shape: f32[32,8], index: 1, kind: input, shape index: {}]   ;;  %s1391_s2 = inlined_call_operand.vmem [shape: f32[32,1], index: 2, kind: input, shape index: {}]   ;;  %s1392_s3 = inlined_call_operand.vmem [shape: f32[16,32], index: 3, kind: input, shape index: {}]   ;;  %s1393_s4 = inlined_call_operand.vmem [shape: f32[16,1], index: 4, kind: input, shape index: {}]   ;;  %s1394_s5 = inlined_call_operand.vmem [shape: f32[3,16], index: 5, kind: input, shape index: {}]   ;;  %s1395_s6 = inlined_call_operand.vmem [shape: f32[3,1], index: 6, kind: input, shape index: {}]   ;;  %s1396_s7 = inlined_call_operand.hbm [shape: f32[3,512], index: 7, kind: output, shape index: {}]  }
   0x1   :  { %14 = vsyncpa [#allocation3 + $0x1], 0  ;;  %s1160_s24 = smov 0   ;;  %s1162_s25 = smov 0  }
   0x2   :  { %s1164_s26 = smov 0   ;;  %s1166_s27 = smov 0  }
   0x3 LB: > { %s1181_s28 = sadd.s32 4294967295, %s1115_s27   ;;  %s850_s29 = sadd.s32 4294967294, %s1115_s27   ;;  %s1115_s27 = sphi %s1166_s27, %s1404_s27   ;;  %s1111_s26 = sphi %s1164_s26, %s1403_s26   ;;  %s1107_s25 = sphi %s1162_s25, %s1402_s25   ;;  %s1103_s24 = sphi %s1160_s24, %s1401_s24  }
   0x4   : > { %s1185_s30 = sadd.s32 1, %s1115_s27   ;;  %s179_s8 = sadd.s32 1, %s1111_s26 }
   0x5   : > { %s176_s9 = ssub.s32 %s1115_s27, %s1185_s30  ;;  %p189_p0 = scmp.ne.s32.totalorder %s1111_s26, %s1107_s25 }
   0x6   : > { %p177_p1 = scmp.eq.s32.totalorder %s176_s9, 0  ;;  %p190_p2 = scmp.eq.s32.totalorder %s1181_s28, 1 }
   0x7   : > { %p195_p3 = scmp.ne.s32.totalorder %s1107_s25, %s1103_s24  ;;  %p196_p4 = scmp.eq.s32.totalorder %s850_s29, 1 }
   0x8   : > { %s1196_s10 = scalar_select %p177_p1, %s1111_s26, %s179_s8  }
   0x9   : > { %p1198_p5 = por %p190_p2, %p189_p0  ;;  %p1202_p6 = por %p196_p4, %p195_p3 }
   0xa   : > { %p853_p7 = scmp.ge.s32.totalorder %s1115_s27, 1  ;;  %p241_p8 = scmp.lt.s32.totalorder %s1115_s27, 3 }
   0xc   : > { %p242_p9 = pnand %p853_p7, %p241_p8 }
   0xd   : > { %s855_s13 = sshll.u32 (!%p242_p9), %s1181_s28, 5  ;;  %vm340_vm0 = vcmask (!%p242_p9), 64512   ;;  %v1212_v0 = vld [vmem:[%s1390_s1] sm:$0xff] (!%p242_p9)  ;;  %v1117_v1 = vmov (!%p242_p9), 0   ;;  %v318_v3 = vld [vmem:[%s1391_s2 + $0x10] sm:$0xff] (!%p242_p9)  ;;  %v317_v4 = vld [vmem:[%s1391_s2 + $0x8] sm:$0xff] (!%p242_p9) }
   0xe   : > { %245 = sbr.rel (%p242_p9) target bundleno = 840 (0x348), region = 48  ;;  %p274_p10 = scmp.lt.s32.totalorder (!%p242_p9), %s855_s13, 63  ;;  %934 = vmatprep.mubr.msk.f32.mxu0 (!%p242_p9), %vm340_vm0, %v1212_v0  ;;  %1043 = vset.pattern.permute.xlu0 (!%p242_p9), %v1117_v1  ;;  %v316_v2 = vld [vmem:[%s1391_s2] sm:$0xff] (!%p242_p9)  ;;  %v319_v5 = vld [vmem:[%s1391_s2 + $0x18] sm:$0xff] (!%p242_p9)  ;;  %vm1235_vm1 = vmpackc.low (!%p242_p9), %vm340_vm0, %vm340_vm0  ;;  %v1118_v61 = vmov (!%p242_p9), 0.0   ;;  %vm560_vm2 = vcmask (!%p242_p9), 261120  }
   0xf   : > { %322 = vperm.xlu0 (!%p242_p9), %1043, %v316_v2   ;;  %1044 = vset.pattern.permute.xlu1 (!%p242_p9), %v1117_v1  ;;  %v548_v7 = vld [vmem:[%s1393_s4] sm:$0xff] (!%p242_p9)  ;;  %v549_v8 = vld [vmem:[%s1393_s4 + $0x8] sm:$0xff] (!%p242_p9)  ;;  %v314_v59 = vld [vmem:[%s1390_s1 + $0x10] sm:$0xff] (!%p242_p9)  ;;  %vm655_vm3 = vcmask (!%p242_p9), 130048   ;;  %vm730_vm4 = vcmask (!%p242_p9), 1042432   ;;  %s270_s18 = sand.u32 (!%p242_p9), 1, %s1107_s25  }
  0x10   : > { %332 = vperm.xlu1 (!%p242_p9), %1044, %v318_v3   ;;  %v649_v18 = vld [vmem:[%s1395_s6] sm:$0x7] (!%p242_p9)  ;;  %v313_v58 = vld [vmem:[%s1390_s1 + $0x8] sm:$0xff] (!%p242_p9)  ;;  %v315_v60 = vld [vmem:[%s1390_s1 + $0x18] sm:$0xff] (!%p242_p9)  ;;  %631 = vmatprep.mubr.f32.mxu1 (!%p242_p9), %v1118_v61  ;;  %s854_s19 = sshll.u32 (!%p242_p9), %s270_s18, 3  ;;  %s901_s20 = sshll.u32 (!%p242_p9), %s1181_s28, 7 }
  0x11   : > { %s272_s21 = scalar_lea.vmem (!%p242_p9), [#allocation2], %s854_s19  ;;  %s1347_s8 = scalar_lea.hbm (!%p242_p9), %s1396_s7, %s901_s20 }
  0x12   : > { %s791_s22 = sshll.u32 (!%p242_p9), %s272_s21, 4  ;;  %s777_s9 = scalar_lea.sflag (!%p242_p9), [#allocation3], %s270_s18  ;;  %s1349_s22 = int_to_ptr.vmem [resolvable:$true] %s791_s22 }
  0x13   : > { %327 = vperm.xlu0 (!%p242_p9), %1043, %v317_v4   ;;  %s1119_s28 = smov (!%p242_p9), [#allocation2]  }
  0x14   : > { %337 = vperm.xlu1 (!%p242_p9), %1044, %v319_v5   ;;  %s1057_s15 = sshll.u32 (!%p242_p9), %s1119_s28, 4  ;;  %s1058_s15 = int_to_ptr.vmem [resolvable:$false] %s1057_s15 }
  0x15   : > { %s1406_s13 = smov (!%p274_p10, %s855_s13), 63  ;;  %p1060_p0 = scmp.lt.s32.totalorder %s1349_s22, %s1058_s15 }
  0x16   : > { %s856_s29 = sshll.u32 %s1406_s13, 3  ;;  %s1059_s13 = scalar_lea.vmem %s1058_s15, 256 }
  0x17   : > { %s1231_s14 = scalar_lea.vmem %s1389_s0, %s856_s29  ;;  %552 = vperm.xlu0 %1043, %v548_v7  }
  0x18   : > { %v296_v9 = vld [vmem:[%s1231_s14 + $0x80] sm:$0xff]  ;;  %v297_v10 = vld [vmem:[%s1231_s14 + $0x88] sm:$0xff]  ;;  %v298_v14 = vld [vmem:[%s1231_s14 + $0x90] sm:$0xff]  ;;  %557 = vperm.xlu1 %1044, %v549_v8  }
  0x19   : > { %v280_v11 = vld [vmem:[%s1231_s14] sm:$0xff]  ;;  %v942_v12 = vpack.c.bf16 %v297_v10, %v296_v9  ;;  %v281_v13 = vld [vmem:[%s1231_s14 + $0x8] sm:$0xff]  ;;  %v299_v15 = vld [vmem:[%s1231_s14 + $0x98] sm:$0xff] }
  0x1a   : > { %v945_v16 = vpack.c.bf16 %v281_v13, %v280_v11  ;;  %v948_v17 = vpack.c.bf16 %v299_v15, %v298_v14  ;;  %v282_v19 = vld [vmem:[%s1231_s14 + $0x10] sm:$0xff]  ;;  %v283_v20 = vld [vmem:[%s1231_s14 + $0x18] sm:$0xff]  ;;  %v300_v21 = vld [vmem:[%s1231_s14 + $0xa0] sm:$0xff] }
  0x1b   : > { %944 = vmatprep.subr.msk.bf16.mxu0 %vm1235_vm1, %v942_v12  ;;  %v301_v22 = vld [vmem:[%s1231_s14 + $0xa8] sm:$0xff]  ;;  %652 = vperm.xlu0 %1043, %v649_v18   ;;  %v951_v23 = vpack.c.bf16 %v283_v20, %v282_v19  ;;  %v284_v25 = vld [vmem:[%s1231_s14 + $0x20] sm:$0xff]  ;;  %v302_v27 = vld [vmem:[%s1231_s14 + $0xb0] sm:$0xff] }
  0x1c   : > { %947 = vmatpush3.bf16.xpose.msk.msra.mxu0 %vm1235_vm1, %v945_v16  ;;  %v954_v24 = vpack.c.bf16 %v301_v22, %v300_v21  ;;  %v285_v26 = vld [vmem:[%s1231_s14 + $0x28] sm:$0xff]  ;;  %v303_v28 = vld [vmem:[%s1231_s14 + $0xb8] sm:$0xff]  ;;  %v286_v31 = vld [vmem:[%s1231_s14 + $0x30] sm:$0xff] }
  0x1d   : > { %950 = vmatprep.subr.msk.bf16.mxu0 %vm1235_vm1, %v948_v17  ;;  %v957_v29 = vpack.c.bf16 %v285_v26, %v284_v25  ;;  %v960_v30 = vpack.c.bf16 %v303_v28, %v302_v27  ;;  %v287_v32 = vld [vmem:[%s1231_s14 + $0x38] sm:$0xff]  ;;  %v304_v33 = vld [vmem:[%s1231_s14 + $0xc0] sm:$0xff]  ;;  %v305_v34 = vld [vmem:[%s1231_s14 + $0xc8] sm:$0xff] }
  0x1e   : > { %v963_v35 = vpack.c.bf16 %v287_v32, %v286_v31  ;;  %v966_v36 = vpack.c.bf16 %v305_v34, %v304_v33  ;;  %v288_v37 = vld [vmem:[%s1231_s14 + $0x40] sm:$0xff]  ;;  %v289_v38 = vld [vmem:[%s1231_s14 + $0x48] sm:$0xff]  ;;  %v306_v39 = vld [vmem:[%s1231_s14 + $0xd0] sm:$0xff] }
  0x1f   : > { %v307_v40 = vld [vmem:[%s1231_s14 + $0xd8] sm:$0xff]  ;;  %v969_v41 = vpack.c.bf16 %v289_v38, %v288_v37  ;;  %v290_v43 = vld [vmem:[%s1231_s14 + $0x50] sm:$0xff]  ;;  %v308_v45 = vld [vmem:[%s1231_s14 + $0xe0] sm:$0xff] }
  0x20   : > { %v972_v42 = vpack.c.bf16 %v307_v40, %v306_v39  ;;  %v291_v44 = vld [vmem:[%s1231_s14 + $0x58] sm:$0xff]  ;;  %v309_v46 = vld [vmem:[%s1231_s14 + $0xe8] sm:$0xff]  ;;  %v292_v49 = vld [vmem:[%s1231_s14 + $0x60] sm:$0xff] }
  0x21   : > { %v975_v47 = vpack.c.bf16 %v291_v44, %v290_v43  ;;  %v978_v48 = vpack.c.bf16 %v309_v46, %v308_v45  ;;  %v293_v50 = vld [vmem:[%s1231_s14 + $0x68] sm:$0xff]  ;;  %v310_v51 = vld [vmem:[%s1231_s14 + $0xf0] sm:$0xff]  ;;  %v311_v52 = vld [vmem:[%s1231_s14 + $0xf8] sm:$0xff] }
  0x22   : > { %v981_v53 = vpack.c.bf16 %v293_v50, %v292_v49  ;;  %v984_v54 = vpack.c.bf16 %v311_v52, %v310_v51  ;;  %v294_v55 = vld [vmem:[%s1231_s14 + $0x70] sm:$0xff]  ;;  %v295_v56 = vld [vmem:[%s1231_s14 + $0x78] sm:$0xff]  ;;  %v547_v31 = vld [vmem:[%s1392_s3 + $0x8] sm:$0xff]  ;;  %s1053_s14 = scalar_lea.vmem %s1349_s22, 128 }
  0x23   : > { %v987_v57 = vpack.c.bf16 %v295_v56, %v294_v55  ;;  %p1054_p11 = scmp.ne.s32.totalorder %s1349_s22, %s1053_s14  ;;  %p1061_p1 = scmp.lt.s32.totalorder %s1059_s13, %s1053_s14 }
  0x24   : > { %953 = vmatpush3.bf16.xpose.msk.msra.mxu0 %vm1235_vm1, %v951_v23 }
  0x25   : > { %956 = vmatprep.subr.msk.bf16.mxu0 %vm1235_vm1, %v954_v24  ;;  %p1055_p12 = pnand %p1054_p11, %p1198_p5  ;;  %p1062_p2 = por %p1061_p1, %p1060_p0 }
  0x27   : > { %p1056_p13 = pneg %p1055_p12 }
  0x29   : > { %p1063_p3 = pnand %p1062_p2, %p1056_p13 }
  0x2c   : > { %959 = vmatpush3.bf16.xpose.msk.msra.mxu0 %vm1235_vm1, %v957_v29 }
  0x2d   : > { %962 = vmatprep.subr.msk.bf16.mxu0 %vm1235_vm1, %v960_v30  ;;  %v546_v30 = vld [vmem:[%s1392_s3] sm:$0xff] }
  0x34   : > { %965 = vmatpush3.bf16.xpose.msk.msra.mxu0 %vm1235_vm1, %v963_v35 }
  0x35   : > { %968 = vmatprep.subr.msk.bf16.mxu0 %vm1235_vm1, %v966_v36 }
  0x3c   : > { %971 = vmatpush3.bf16.xpose.msk.msra.mxu0 %vm1235_vm1, %v969_v41 }
  0x3d   : > { %974 = vmatprep.subr.msk.bf16.mxu0 %vm1235_vm1, %v972_v42 }
  0x44   : > { %977 = vmatpush3.bf16.xpose.msk.msra.mxu0 %vm1235_vm1, %v975_v47 }
  0x45   : > { %980 = vmatprep.subr.msk.bf16.mxu0 %vm1235_vm1, %v978_v48  ;;  %v648_v48 = vld [vmem:[%s1394_s5] sm:$0x7] }
  0x4c   : > { %983 = vmatpush3.bf16.xpose.msk.msra.mxu0 %vm1235_vm1, %v981_v53 }
  0x4d   : > { %986 = vmatprep.subr.msk.bf16.mxu0 %vm1235_vm1, %v984_v54 }
  0x54   : > { %989 = vmatpush3.bf16.xpose.msk.msra.mxu0 %vm1235_vm1, %v987_v57 }
  0x5b   : > { %935 = vmatmul.mubr.msk.f32.vlgmr.msra.gmra.mrb[0].mxu0 %vm340_vm0, %v1212_v0 }
  0x5c   : > { %936 = vmatprep.mubr.msk.f32.mxu0 %vm340_vm0, %v313_v58 }
  0x5f   : > { %937 = vmatmul.mubr.msk.f32.gmra.mrb[2].mxu0 %vm340_vm0, %v313_v58 }
  0x60   : > { %938 = vmatprep.mubr.msk.f32.mxu0 %vm340_vm0, %v314_v59 }
  0x63   : > { %939 = vmatmul.mubr.msk.f32.gmra.mrb[4].mxu0 %vm340_vm0, %v314_v59 }
  0x64   : > { %940 = vmatprep.mubr.msk.f32.mxu0 %vm340_vm0, %v315_v60 }
  0x67   : > { %941 = vmatmul.mubr.msk.f32.gmra.mrb[6].mxu0 %vm340_vm0, %v315_v60 }
  0x8e   : > { %v323_v62 = vpop.permute.xlu0 %322 }
  0x8f   : > { %v333_v7 = vpop.permute.xlu1 %332 }
  0x92   : > { %v328_v2 = vpop.permute.xlu0 %327 }
  0x93   : > { %v338_v18 = vpop.permute.xlu1 %337 }
  0x96   : > { %v553_v34 = vpop.permute.xlu0 %552 }
  0x97   : > { %v558_v36 = vpop.permute.xlu1 %557 }
  0x9a   : > { %v653_v49 = vpop.permute.xlu0 %652 }
 0x12e   : > { %v515_v63 = vpop.f32.mrb[0].mxu0 }
 0x12f   : > { %v517_v0 = vpop.f32.mrb[1].mxu0  ;;  %v516_v1 = vadd.f32 %v515_v63, %v323_v62 }
 0x130   : > { %v518_v3 = vadd.f32 %v517_v0, %v323_v62 }
 0x131   : > { %v538_v9 = vmax.f32 %v516_v1, 0.0 }
 0x132   : > { %v521_v4 = vpop.f32.mrb[2].mxu0  ;;  %v539_v11 = vmax.f32 %v518_v3, 0.0 }
 0x133   : > { %v522_v5 = vadd.f32 %v521_v4, %v328_v2  ;;  %v523_v6 = vpop.f32.mrb[3].mxu0 }
 0x134   : > { %v524_v8 = vadd.f32 %v523_v6, %v328_v2 }
 0x135   : > { %v540_v10 = vmax.f32 %v522_v5, 0.0 }
 0x136   : > { %v541_v12 = vmax.f32 %v524_v8, 0.0  ;;  %v527_v13 = vpop.f32.mrb[4].mxu0 }
 0x137   : > { %v529_v14 = vpop.f32.mrb[5].mxu0  ;;  %v992_v15 = vpack.c.bf16 %v540_v10, %v538_v9  ;;  %v528_v17 = vadd.f32 %v527_v13, %v333_v7 }
 0x138   : > { %v990_v16 = vpack.c.bf16 %v541_v12, %v539_v11  ;;  %v530_v19 = vadd.f32 %v529_v14, %v333_v7 }
 0x139   : > { %v542_v24 = vmax.f32 %v528_v17, 0.0 }
 0x13a   : > { %v533_v20 = vpop.f32.mrb[6].mxu0  ;;  %991 = vmatprep.subr.bf16.mxu1 %v990_v16  ;;  %v543_v26 = vmax.f32 %v530_v19, 0.0 }
 0x13b   : > { %v534_v21 = vadd.f32 %v533_v20, %v338_v18  ;;  %v535_v22 = vpop.f32.mrb[7].mxu0  ;;  %993 = vmatpush1.bf16.msra.mxu1 %v992_v15 }
 0x13c   : > { %v536_v23 = vadd.f32 %v535_v22, %v338_v18 }
 0x13d   : > { %v544_v25 = vmax.f32 %v534_v21, 0.0 }
 0x13e   : > { %v545_v27 = vmax.f32 %v536_v23, 0.0 }
 0x13f   : > { %v996_v28 = vpack.c.bf16 %v544_v25, %v542_v24 }
 0x140   : > { %v994_v29 = vpack.c.bf16 %v545_v27, %v543_v26 }
 0x142   : > { %995 = vmatprep.subr.bf16.mxu1 %v994_v29 }
 0x143   : > { %997 = vmatpush1.bf16.msra.mxu1 %v996_v28 }
 0x146   : > { %893 = vmatmul.mubr.msk.f32.vlgmr.msra.gmra.mrb[0].mxu1 %vm560_vm2, %v546_v30 }
 0x147   : > { %637 = vmatprep.mubr.f32.mxu1 %v1118_v61 }
 0x14a   : > { %894 = vmatmul.mubr.msk.f32.gmra.mrb[2].mxu1 %vm560_vm2, %v547_v31 }
 0x14b   : > { %723 = vmatprep.mubr.f32.mxu1 %v1118_v61 }
 0x219   : > { %v633_v32 = vpop.f32.mrb[0].mxu1 }
 0x21a   : > { %v635_v33 = vpop.f32.mrb[1].mxu1  ;;  %v634_v35 = vadd.f32 %v633_v32, %v553_v34 }
 0x21b   : > { %v636_v37 = vadd.f32 %v635_v33, %v553_v34 }
 0x21c   : > { %v644_v42 = vmax.f32 %v634_v35, 0.0 }
 0x21d   : > { %v639_v38 = vpop.f32.mrb[2].mxu1  ;;  %v645_v44 = vmax.f32 %v636_v37, 0.0 }
 0x21e   : > { %v640_v39 = vadd.f32 %v639_v38, %v558_v36  ;;  %v641_v40 = vpop.f32.mrb[3].mxu1 }
 0x21f   : > { %v642_v41 = vadd.f32 %v641_v40, %v558_v36 }
 0x220   : > { %v646_v43 = vmax.f32 %v640_v39, 0.0 }
 0x221   : > { %v647_v45 = vmax.f32 %v642_v41, 0.0 }
 0x222   : > { %v1000_v46 = vpack.c.bf16 %v646_v43, %v644_v42 }
 0x223   : > { %v998_v47 = vpack.c.bf16 %v647_v45, %v645_v44 }
 0x225   : > { %999 = vmatprep.subr.bf16.mxu1 %v998_v47 }
 0x226   : > { %1001 = vmatpush1.bf16.msra.mxu1 %v1000_v46 }
 0x229   : > { %895 = vmatmul.mubr.msk.f32.vlgmr.msra.gmra.mrb[4].mxu1 %vm655_vm3, %v648_v48 }
 0x2fc   : > { %v725_v50 = vpop.f32.mrb[4].mxu1 }
 0x2fd   : > { %v726_v51 = vadd.f32 %v725_v50, %v653_v49  ;;  %v727_v52 = vpop.f32.mrb[5].mxu1 }
 0x2fe   : > { %v728_v53 = vadd.f32 %v727_v52, %v653_v49 }
 0x2ff   : > { %v731_v54 = vsel %vm730_vm4, %v726_v51, -inf }
 0x300   : > { %v732_v55 = vrot.slane %v731_v54, 4  ;;  %v738_v56 = vsel %vm730_vm4, %v728_v53, -inf }
 0x301   : > { %v739_v57 = vrot.slane %v738_v56, 4 }
 0x302   : > { %v733_v58 = vmax.f32 %v731_v54, %v732_v55 }
 0x303   : > { %v740_v59 = vmax.f32 %v738_v56, %v739_v57 }
 0x304   : > { %v734_v60 = vrot.slane %v733_v58, 2 }
 0x305   : > { %v741_v61 = vrot.slane %v740_v59, 2 }
 0x306   : > { %v735_v62 = vmax.f32 %v733_v58, %v734_v60 }
 0x307   : > { %v742_v63 = vmax.f32 %v740_v59, %v741_v61 }
 0x308   : > { %v736_v0 = vrot.slane %v735_v62, 1 }
 0x309   : > { %v743_v1 = vrot.slane %v742_v63, 1 }
 0x30a   : > { %v737_v2 = vmax.f32 %v735_v62, %v736_v0 }
 0x30b   : > { %v744_v3 = vmax.f32 %v742_v63, %v743_v1 }
 0x30c   : > { %v745_v4 = vsub.f32 %v726_v51, %v737_v2 }
 0x30d   : > { %v746_v5 = vsub.f32 %v728_v53, %v744_v3 }
 0x30e   : > { %v747_v6 = vmul.f32 1.442695, %v745_v4 }
 0x30f   : > { %v749_v7 = vmul.f32 1.442695, %v746_v5 }
 0x310   : > { %1045 = vpow2.f32 %v747_v6 }
 0x311   : > { %1047 = vpow2.f32 %v749_v7 }
 0x31a   : > { %v1046_v8 = vpop.eup %1045 }
 0x31b   : > { %v1048_v9 = vpop.eup %1047  ;;  %v751_v10 = vsel %vm730_vm4, %v1046_v8, 0.0 }
 0x31c   : > { %v752_v11 = vrot.slane %v751_v10, 4  ;;  %v758_v12 = vsel %vm730_vm4, %v1048_v9, 0.0 }
 0x31d   : > { %v759_v13 = vrot.slane %v758_v12, 4 }
 0x31e   : > { %v753_v14 = vadd.f32 %v752_v11, %v751_v10 }
 0x31f   : > { %v760_v15 = vadd.f32 %v759_v13, %v758_v12 }
 0x320   : > { %v754_v16 = vrot.slane %v753_v14, 2 }
 0x321   : > { %v761_v17 = vrot.slane %v760_v15, 2 }
 0x322   : > { %v755_v18 = vadd.f32 %v754_v16, %v753_v14 }
 0x323   : > { %v762_v19 = vadd.f32 %v761_v17, %v760_v15 }
 0x324   : > { %v756_v20 = vrot.slane %v755_v18, 1 }
 0x325   : > { %v763_v21 = vrot.slane %v762_v19, 1 }
 0x326   : > { %v757_v22 = vadd.f32 %v756_v20, %v755_v18 }
 0x327   : > { %v764_v23 = vadd.f32 %v763_v21, %v762_v19 }
 0x328   : > { %1049 = vlog2.f32 %v757_v22 }
 0x329   : > { %1051 = vlog2.f32 %v764_v23 }
 0x332   : > { %v1050_v24 = vpop.eup %1049 }
 0x333   : > { %v1052_v25 = vpop.eup %1051  ;;  %v766_v26 = vmul.f32 0.6931472, %v1050_v24 }
 0x334   : > { %v768_v27 = vmul.f32 0.6931472, %v1052_v25 }
 0x335   : > { %v769_v28 = vsub.f32 %v745_v4, %v766_v26 }
 0x336   : > { %v770_v29 = vsub.f32 %v746_v5, %v768_v27 }
 0x338   : > { %v773_v30 = vcombine.low %v769_v28, %v770_v29 }
 0x33a   : > { %775 = vst [vmem:[%s272_s21] sm:$0x77] %v773_v30 }
 0x33b   : > { %1066 = shalt.err (!%p1063_p3)
}
 0x33c   : > { %s1067_s16 = scalar_lea.hbm %s1347_s8, 128  ;;  %s1071_s19 = scalar_lea.hbm %s1396_s7, 256 }
 0x33d   : > { %p1068_p4 = scmp.ne.s32.totalorder %s1347_s8, %s1067_s16  ;;  %p1072_p9 = scmp.lt.u32.totalorder %s1347_s8, %s1396_s7 }
 0x33e   : > { %p1073_p10 = scmp.lt.u32.totalorder %s1071_s19, %s1067_s16  ;;  %p1075_p12 = scmp.lt.u32.totalorder %s1067_s16, %s1347_s8 }
 0x33f   : > { %p1069_p7 = pnand %p1068_p4, %p1198_p5 }
 0x340   : > { %p1074_p11 = por %p1073_p10, %p1072_p9 }
 0x341   : > { %p1070_p8 = pneg %p1069_p7 }
 0x342   : > { %p1076_p13 = por %p1075_p12, %p1074_p11 }
 0x344   : > { %p1077_p0 = pnand %p1076_p13, %p1070_p8 }
 0x346   : > { %1080 = shalt.err (!%p1077_p0)
}
 0x347   : > { %1002 = dma.vmem_to_hbm [thread:$0]  (%p1198_p5), %s1349_s22, 128, %s1347_s8, %s777_s9  }
 0x348 PF: > { %p1008_p1 = scmp.ge.s32.totalorder %s1115_s27, 2  ;;  %s803_s23 = sand.u32 1, %s1103_s24  }
 0x349   : > { %s804_s29 = scalar_lea.sflag [#allocation3], %s803_s23 }
 0x34a   : > { %p1005_p2 = pnand %p1008_p1, %p1202_p6 }
 0x34c   : > { %1098 = dma.done.wait (!%p1005_p2), %s804_s29, 128  }
 0x34d   : > { %1100 = vsyncadd (!%p1005_p2), %s804_s29, 4294967168  ;;  %p17_p3 = scmp.ge.s32.totalorder %s1185_s30, 4   ;;  %s1401_s24 = smov %s1107_s25 }
 0x34e   : > { %s1402_s25 = smov %s1111_s26  ;;  %s1403_s26 = smov %s1196_s10 }
 0x34f   : > { %s1404_s27 = smov %s1185_s30  ;;  %19 = sbr.rel (!%p17_p3) target bundleno = 3 (0x3), region = 83 }
 0x356   :  { %809 = vsyncpa [#allocation3], 1 }
 0x357   :  { %811 = vsyncpa [#allocation3 + $0x1], 1 }

</bundles_post_ra>
